<compile_context>
chip_gen: v6e
topology: v6e:2x2x1
jax: 0.10.0
libtpu: 0.0.40
codegen_flags: <defaults>
</compile_context>

<pallas_src>
import functools

import jax
import jax.numpy as jnp
from jax.experimental import pallas as pl
from jax.experimental.pallas import tpu as pltpu


# ---------------------------------------------------------------------------
# helpers
# ---------------------------------------------------------------------------
def _pick_tile(n, preferred, align):
    """Largest tile <= preferred that divides n and is a multiple of `align`."""
    if n <= preferred:
        return n
    t = (preferred // align) * align
    while t >= align:
        if n % t == 0:
            return t
        t -= align
    return n


def _invariant_spec(shape):
    """BlockSpec covering the full (grid-invariant) array."""
    n = len(shape)
    return pl.BlockSpec(shape, lambda *_: (0,) * n)


def _layernorm(x, gamma, beta, eps=1e-5):
    mu = jnp.mean(x, axis=-1, keepdims=True)
    var = jnp.mean((x - mu) ** 2, axis=-1, keepdims=True)
    return (x - mu) * jax.lax.rsqrt(var + eps) * gamma + beta


def _default_vmem_limit():
    """~3/4 of physical VMEM: ~96 MiB on v5e/v6e (128 MiB), ~48 MiB on v7x (64 MiB)."""
    try:
        cap = int(pltpu.get_tpu_info().vmem_capacity_bytes)
    except Exception:
        cap = 64 * 1024 * 1024
    return int(max(32 * 1024 * 1024, min((cap * 3) // 4, 96 * 1024 * 1024)))


# ---------------------------------------------------------------------------
# kernels
# ---------------------------------------------------------------------------
def qkv_proj_kernel(x_ref, w_ref, b_ref, o_ref):
    """Fused Q/K/V projection for one (batch, seq-tile) grid step."""
    o_ref[0] = (jnp.dot(x_ref[0], w_ref[...], preferred_element_type=jnp.float32)
                + b_ref[...]).astype(o_ref.dtype)


def flash_attn_kernel(*refs, has_mask):
    """Online-softmax attention over streamed KV tiles; heads batched in einsum."""
    if has_mask:
        q_ref, k_ref, v_ref, mask_ref, o_ref, m_sc, l_sc, acc_sc = refs
    else:
        q_ref, k_ref, v_ref, o_ref, m_sc, l_sc, acc_sc = refs
        mask_ref = None

    f32, bf16 = jnp.float32, jnp.bfloat16
    ki = pl.program_id(2)

    @pl.when(ki == 0)
    def _():
        m_sc[...] = jnp.full_like(m_sc, -jnp.inf)
        l_sc[...] = jnp.zeros_like(l_sc)
        acc_sc[...] = jnp.zeros_like(acc_sc)

    q = q_ref[0]                       # (H, TQ, dh) bf16, 1/sqrt(dh) folded into Wq
    k = k_ref[0]                       # (H, TK, dh) bf16
    v = v_ref[0]                       # (H, TK, dh) bf16

    s = jnp.einsum('hqd,hkd->hqk', q, k, preferred_element_type=f32)   # (H,TQ,TK)
    if has_mask:
        s = jnp.where(mask_ref[0][None, :, :] > 0, s, jnp.float32(-1e9))

    m_prev = m_sc[...]                                   # (H, TQ, 1)
    m_new = jnp.maximum(m_prev, jnp.max(s, axis=-1, keepdims=True))
    alpha = jnp.exp(m_prev - m_new)
    p = jnp.exp(s - m_new)
    l_sc[...] = alpha * l_sc[...] + jnp.sum(p, axis=-1, keepdims=True)
    acc_sc[...] = alpha * acc_sc[...] + jnp.einsum(
        'hqk,hkd->hqd', p.astype(bf16), v, preferred_element_type=f32)
    m_sc[...] = m_new

    @pl.when(ki == pl.num_programs(2) - 1)
    def _():
        o_ref[0] = (acc_sc[...]
                    * pl.reciprocal(l_sc[...], approx=True)).astype(o_ref.dtype)


def out_ffn_kernel(ctx_ref, x_ref, wo_ref, bo_ref, ln1_g_ref, ln1_b_ref,
                   w1_ref, b1_ref, w2_ref, b2_ref, ln2_g_ref, ln2_b_ref,
                   o_ref, h1_sc, acc_sc):
    """Attention output projection + residual/LN1 + FF-tiled FFN + residual/LN2."""
    f32, bf16 = jnp.float32, jnp.bfloat16
    f = pl.program_id(2)

    @pl.when(f == 0)
    def _():
        # One-shot (TS,D)@(D,D) output projection — no per-head K=dh matmuls.
        a = jnp.dot(ctx_ref[0], wo_ref[...], preferred_element_type=f32) + bo_ref[...]
        h1 = _layernorm(x_ref[0].astype(f32) + a, ln1_g_ref[...], ln1_b_ref[...])
        h1_sc[...] = h1
        acc_sc[...] = jnp.zeros_like(acc_sc)

    ff = jnp.dot(h1_sc[...].astype(bf16), w1_ref[...],
                 preferred_element_type=f32) + b1_ref[...]
    ff = jnp.maximum(ff, 0.0)
    acc_sc[...] += jnp.dot(ff.astype(bf16), w2_ref[...], preferred_element_type=f32)

    @pl.when(f == pl.num_programs(2) - 1)
    def _():
        out = _layernorm(h1_sc[...] + acc_sc[...] + b2_ref[...],
                         ln2_g_ref[...], ln2_b_ref[...])
        o_ref[0] = out.astype(o_ref.dtype)


def lm_head_kernel(x_ref, w_ref, b_ref, o_ref):
    """Vocabulary projection for one (batch, seq-tile, vocab-tile) grid step."""
    o_ref[0] = (jnp.dot(x_ref[0], w_ref[...], preferred_element_type=jnp.float32)
                + b_ref[...]).astype(o_ref.dtype)


# ---------------------------------------------------------------------------
# pallas_call wrappers
# ---------------------------------------------------------------------------
def qkv_proj(x, w, b, vmem_limit):
    B, S, D = x.shape
    D3 = w.shape[1]
    ts = _pick_tile(S, 256, 16)
    return pl.pallas_call(
        qkv_proj_kernel,
        out_shape=jax.ShapeDtypeStruct((B, S, D3), jnp.bfloat16),
        grid=(B, S // ts),
        in_specs=[pl.BlockSpec((1, ts, D), lambda b, i: (b, i, 0)),
                  _invariant_spec(w.shape),
                  _invariant_spec(b.shape)],
        out_specs=pl.BlockSpec((1, ts, D3), lambda b, i: (b, i, 0)),
        compiler_params=pltpu.CompilerParams(
            dimension_semantics=("parallel", "parallel"),
            vmem_limit_bytes=vmem_limit),
    )(x, w, b)


def flash_attention(q, k, v, mask, vmem_limit):
    B, H, S, dh = q.shape
    tq = _pick_tile(S, 256, 16)
    tk = _pick_tile(S, 512, 16)

    in_specs = [pl.BlockSpec((1, H, tq, dh), lambda b, qi, ki: (b, 0, qi, 0)),
                pl.BlockSpec((1, H, tk, dh), lambda b, qi, ki: (b, 0, ki, 0)),
                pl.BlockSpec((1, H, tk, dh), lambda b, qi, ki: (b, 0, ki, 0))]
    inputs = [q, k, v]
    if mask is not None:
        in_specs.append(pl.BlockSpec((1, tq, tk), lambda b, qi, ki: (b, qi, ki)))
        inputs.append(mask)

    kernel = functools.partial(flash_attn_kernel, has_mask=mask is not None)
    return pl.pallas_call(
        kernel,
        out_shape=jax.ShapeDtypeStruct((B, H, S, dh), jnp.bfloat16),
        grid=(B, S // tq, S // tk),
        in_specs=in_specs,
        out_specs=pl.BlockSpec((1, H, tq, dh), lambda b, qi, ki: (b, 0, qi, 0)),
        scratch_shapes=[pltpu.VMEM((H, tq, 1), jnp.float32),
                        pltpu.VMEM((H, tq, 1), jnp.float32),
                        pltpu.VMEM((H, tq, dh), jnp.float32)],
        compiler_params=pltpu.CompilerParams(
            dimension_semantics=("parallel", "parallel", "arbitrary"),
            vmem_limit_bytes=vmem_limit),
    )(*inputs)


def attn_out_ffn(ctx, x, p, vmem_limit):
    B, S, D = x.shape
    FF = p["w1"].shape[1]
    ts = _pick_tile(S, 256, 16)
    tf = _pick_tile(FF, 1024, 128)
    return pl.pallas_call(
        out_ffn_kernel,
        out_shape=jax.ShapeDtypeStruct((B, S, D), jnp.bfloat16),
        grid=(B, S // ts, FF // tf),
        in_specs=[pl.BlockSpec((1, ts, D), lambda b, i, f: (b, i, 0)),   # ctx
                  pl.BlockSpec((1, ts, D), lambda b, i, f: (b, i, 0)),   # residual x
                  _invariant_spec(p["wo"].shape),
                  _invariant_spec(p["bo"].shape),
                  _invariant_spec(p["ln1_g"].shape),
                  _invariant_spec(p["ln1_b"].shape),
                  pl.BlockSpec((D, tf), lambda b, i, f: (0, f)),
                  pl.BlockSpec((1, tf), lambda b, i, f: (0, f)),
                  pl.BlockSpec((tf, D), lambda b, i, f: (f, 0)),
                  _invariant_spec(p["b2"].shape),
                  _invariant_spec(p["ln2_g"].shape),
                  _invariant_spec(p["ln2_b"].shape)],
        out_specs=pl.BlockSpec((1, ts, D), lambda b, i, f: (b, i, 0)),
        scratch_shapes=[pltpu.VMEM((ts, D), jnp.float32),   # h1 (post-LN1)
                        pltpu.VMEM((ts, D), jnp.float32)],  # FFN accumulator
        compiler_params=pltpu.CompilerParams(
            dimension_semantics=("parallel", "parallel", "arbitrary"),
            vmem_limit_bytes=vmem_limit),
    )(ctx, x, p["wo"], p["bo"], p["ln1_g"], p["ln1_b"],
      p["w1"], p["b1"], p["w2"], p["b2"], p["ln2_g"], p["ln2_b"])


def lm_head(x, w, b, vmem_limit):
    B, S, D = x.shape
    V = w.shape[1]
    ts = _pick_tile(S, 256, 16)
    tv = _pick_tile(V, 1024, 128)
    # Output kept f32 to match LLMLayer's final .to(torch.float32); emit bf16
    # here instead if a downstream consumer (softmax / top-k) takes bf16.
    return pl.pallas_call(
        lm_head_kernel,
        out_shape=jax.ShapeDtypeStruct((B, S, V), jnp.float32),
        grid=(B, S // ts, V // tv),
        in_specs=[pl.BlockSpec((1, ts, D), lambda b, i, j: (b, i, 0)),
                  pl.BlockSpec((D, tv), lambda b, i, j: (0, j)),
                  pl.BlockSpec((1, tv), lambda b, i, j: (0, j))],
        out_specs=pl.BlockSpec((1, ts, tv), lambda b, i, j: (b, i, j)),
        compiler_params=pltpu.CompilerParams(
            dimension_semantics=("parallel", "parallel", "parallel"),
            vmem_limit_bytes=vmem_limit),
    )(x, w, b)


# ---------------------------------------------------------------------------
# model glue (embedding lookup, positional encoding, head split/merge, params)
# ---------------------------------------------------------------------------
def decoder_layer(x, p, num_heads, mask, vmem_limit):
    B, S, D = x.shape
    H = num_heads
    dh = D // H

    qkv = qkv_proj(x, p["wqkv"], p["bqkv"], vmem_limit)          # (B, S, 3D) bf16
    qkv = qkv.reshape(B, S, 3, H, dh)                            # XLA layout plumbing
    q = qkv[:, :, 0].transpose(0, 2, 1, 3)                       # (B, H, S, dh)
    k = qkv[:, :, 1].transpose(0, 2, 1, 3)
    v = qkv[:, :, 2].transpose(0, 2, 1, 3)

    ctx = flash_attention(q, k, v, mask, vmem_limit)             # (B, H, S, dh) bf16
    ctx = ctx.transpose(0, 2, 1, 3).reshape(B, S, D)             # merge heads (glue)

    return attn_out_ffn(ctx, x, p, vmem_limit)                   # (B, S, D) bf16


def sinusoidal_positional_encoding(seq_len, dim):
    pos = jnp.arange(seq_len, dtype=jnp.float32)[:, None]
    i = jnp.arange(0, dim, 2, dtype=jnp.float32)[None, :]
    angle = pos / jnp.power(10000.0, i / dim)
    pe = jnp.zeros((seq_len, dim), dtype=jnp.float32)
    pe = pe.at[:, 0::2].set(jnp.sin(angle))
    pe = pe.at[:, 1::2].set(jnp.cos(angle))
    return pe


def init_params(key, vocab, dim, ff_dim, num_heads, num_layers, num_stacks):
    dh = dim // num_heads
    q_scale = 1.0 / float(dh) ** 0.5

    def dense(k, shape, scale=0.02):
        # weights stored bf16 (MXU operand dtype); biases / LN params in f32
        return (jax.random.normal(k, shape, jnp.float32) * scale).astype(jnp.bfloat16)

    keys = jax.random.split(key, 2 + num_stacks * num_layers)
    params = {
        "token_embedding": jax.random.normal(keys[0], (vocab, dim), jnp.float32) * 0.02,
        "lm_head_w": dense(keys[1], (dim, vocab)),
        "lm_head_b": jnp.zeros((1, vocab), jnp.float32),
        "stacks": [],
    }
    ki = 2
    for _ in range(num_stacks):
        stack = []
        for _ in range(num_layers):
            lk = jax.random.split(keys[ki], 4)
            ki += 1
            # Fused [Wq | Wk | Wv]; the 1/sqrt(dh) attention scale is folded
            # into the Wq columns at parameter-prep time (no in-kernel scale).
            wqkv = jax.random.normal(lk[0], (dim, 3 * dim), jnp.float32) * 0.02
            wqkv = wqkv.at[:, :dim].multiply(q_scale)
            layer = {
                "wqkv": wqkv.astype(jnp.bfloat16),
                "bqkv": jnp.zeros((1, 3 * dim), jnp.float32),
                "wo": dense(lk[1], (dim, dim)),
                "bo": jnp.zeros((1, dim), jnp.float32),
                "ln1_g": jnp.ones((1, dim), jnp.float32),
                "ln1_b": jnp.zeros((1, dim), jnp.float32),
                "w1": dense(lk[2], (dim, ff_dim)),
                "b1": jnp.zeros((1, ff_dim), jnp.float32),
                "w2": dense(lk[3], (ff_dim, dim)),
                "b2": jnp.zeros((1, dim), jnp.float32),
                "ln2_g": jnp.ones((1, dim), jnp.float32),
                "ln2_b": jnp.zeros((1, dim), jnp.float32),
            }
            stack.append(layer)
        params["stacks"].append(stack)
    return params


def llm_forward(tokens, mask, params, num_heads):
    """Mirrors LLMLayer.forward: embed -> pos-enc -> decoder stacks -> lm head."""
    vmem_limit = _default_vmem_limit()

    emb = params["token_embedding"][tokens]                      # (B,S,D) gather (glue)
    B, S, D = emb.shape
    h = (emb + sinusoidal_positional_encoding(S, D)[None]).astype(jnp.bfloat16)

    mask_bf16 = mask.astype(jnp.bfloat16)
    for stack_idx, stack in enumerate(params["stacks"]):
        # matches the reference: only the first stack sees the provided mask;
        # afterwards mask := ones, so the mask input / where is dropped entirely.
        stack_mask = mask_bf16 if stack_idx == 0 else None
        for layer in stack:
            h = decoder_layer(h, layer, num_heads, stack_mask, vmem_limit)

    logits = lm_head(h, params["lm_head_w"], params["lm_head_b"], vmem_limit)
    return logits                                                # (B, S, V) f32


# ---------------------------------------------------------------------------
# Demo
# ---------------------------------------------------------------------------
if __name__ == "__main__":
    B, S = 2, 8
    VOCAB = 64
    DIM = 32
    HEADS = 4
    LAYERS_PER_STACK = 2
    STACKS = 2
    FF_DIM = 4 * DIM

    key = jax.random.PRNGKey(0)
    k_par, k_tok = jax.random.split(key)
    params = init_params(k_par, VOCAB, DIM, FF_DIM, HEADS, LAYERS_PER_STACK, STACKS)

    tokens = jax.random.randint(k_tok, (B, S), 0, VOCAB, dtype=jnp.int32)
    causal = jnp.tril(jnp.ones((S, S), jnp.float32))             # 1 = attend
    mask = jnp.broadcast_to(causal, (B, S, S))

    logits = llm_forward(tokens, mask, params, HEADS)
    jax.block_until_ready(logits)

    assert logits.shape == (B, S, VOCAB)
    assert logits.dtype == jnp.float32
    assert bool(jnp.all(jnp.isfinite(logits)))
    print("KERNEL_OK")
</pallas_src>

<mosaic_0001>
module attributes {stable_mosaic.version = 11 : i64} {
  func.func @qkv_proj_kernel(%arg0: i32, %arg1: i32, %arg2: memref<1x8x32xbf16, #tpu.memory_space<vmem>>, %arg3: memref<32x96xbf16, #tpu.memory_space<vmem>>, %arg4: memref<1x96xf32, #tpu.memory_space<vmem>>, %arg5: memref<1x8x96xbf16, #tpu.memory_space<vmem>>) attributes {dimension_semantics = [#tpu.dimension_semantics<parallel>, #tpu.dimension_semantics<parallel>], iteration_bounds = array<i64: 2, 1>, scalar_prefetch = 0 : i64, scratch_operands = 0 : i64, tpu.core_type = #tpu.core_type<tc>, window_params = [{transform_indices = @transform_0, window_bounds = array<i64: 1, 8, 32>}, {pipeline_mode = #tpu.pipeline_mode<synchronous>, transform_indices = @transform_1, window_bounds = array<i64: 32, 96>}, {pipeline_mode = #tpu.pipeline_mode<synchronous>, transform_indices = @transform_2, window_bounds = array<i64: 1, 96>}, {transform_indices = @transform_3, window_bounds = array<i64: 1, 8, 96>}]} {
    %c0 = arith.constant 0 : index
    %c0_0 = arith.constant 0 : index
    %c0_1 = arith.constant 0 : index
    %0 = vector.load %arg2[%c0, %c0_0, %c0_1] : memref<1x8x32xbf16, #tpu.memory_space<vmem>>, vector<1x8x32xbf16>
    %1 = vector.shape_cast %0 : vector<1x8x32xbf16> to vector<8x32xbf16>
    %c0_2 = arith.constant 0 : index
    %c0_3 = arith.constant 0 : index
    %2 = vector.load %arg3[%c0_2, %c0_3] : memref<32x96xbf16, #tpu.memory_space<vmem>>, vector<32x96xbf16>
    %cst = arith.constant dense<0.000000e+00> : vector<8x96xf32>
    %3 = tpu.matmul %1, %2, %cst {dimension_numbers = #tpu.dot_dimension_numbers<[1], [0], [0], [1], [0, 0, 1, 1], [], []>} : vector<8x32xbf16>, vector<32x96xbf16>, vector<8x96xf32> -> vector<8x96xf32>
    %c0_4 = arith.constant 0 : index
    %c0_5 = arith.constant 0 : index
    %4 = vector.load %arg4[%c0_4, %c0_5] : memref<1x96xf32, #tpu.memory_space<vmem>>, vector<1x96xf32>
    %5 = vector.broadcast %4 : vector<1x96xf32> to vector<8x96xf32>
    %6 = arith.addf %3, %5 : vector<8x96xf32>
    %7 = arith.truncf %6 : vector<8x96xf32> to vector<8x96xbf16>
    %c0_6 = arith.constant 0 : index
    %c0_7 = arith.constant 0 : index
    %c0_8 = arith.constant 0 : index
    %8 = vector.load %arg5[%c0_6, %c0_7, %c0_8] : memref<1x8x96xbf16, #tpu.memory_space<vmem>>, vector<1x8x96xbf16>
    %9 = vector.shape_cast %8 : vector<1x8x96xbf16> to vector<8x96xbf16>
    %10 = vector.shape_cast %7 : vector<8x96xbf16> to vector<1x8x96xbf16>
    tpu.vector_store %arg5[%c0_6, %c0_7, %c0_8], %10 {strides = array<i32>} : memref<1x8x96xbf16, #tpu.memory_space<vmem>>, vector<1x8x96xbf16>,
    return
  }
  func.func @transform_0(%arg0: i32, %arg1: i32) -> (i32, i32, i32) {
    %c0_i32 = arith.constant 0 : i32
    %c0_i32_0 = arith.constant 0 : i32
    return %arg0, %arg1, %c0_i32 : i32, i32, i32
  }
  func.func @transform_1(%arg0: i32, %arg1: i32) -> (i32, i32) {
    %c0_i32 = arith.constant 0 : i32
    %c0_i32_0 = arith.constant 0 : i32
    %c0_i32_1 = arith.constant 0 : i32
    return %c0_i32, %c0_i32_0 : i32, i32
  }
  func.func @transform_2(%arg0: i32, %arg1: i32) -> (i32, i32) {
    %c0_i32 = arith.constant 0 : i32
    %c0_i32_0 = arith.constant 0 : i32
    %c0_i32_1 = arith.constant 0 : i32
    return %c0_i32, %c0_i32_0 : i32, i32
  }
  func.func @transform_3(%arg0: i32, %arg1: i32) -> (i32, i32, i32) {
    %c0_i32 = arith.constant 0 : i32
    %c0_i32_0 = arith.constant 0 : i32
    return %arg0, %arg1, %c0_i32 : i32, i32, i32
  }
}

</mosaic_0001>

<bundles_post_ra>
// kernel: tpu_custom_call.1
= control target key start
LH: loop header
LB: loop body
LE: loop exit
PB: predicated region body
PF: predicated region fallthrough
CT: control target
= control target key end

     0   :  { %8 = vsyncpa [#allocation3], 0  ;;  %s853_s0 = inlined_call_operand.hbm [shape: bf16[2,8,32], index: 0, kind: input, shape index: {}]   ;;  %s854_s1 = inlined_call_operand.hbm [shape: bf16[32,96], index: 1, kind: input, shape index: {}]   ;;  %s855_s2 = inlined_call_operand.vmem [shape: f32[1,96], index: 2, kind: input, shape index: {}]   ;;  %s856_s3 = inlined_call_operand.hbm [shape: bf16[2,8,96], index: 3, kind: output, shape index: {}]  }
   0x1   :  { %10 = vsyncpa [#allocation3 + $0x1], 0 }
   0x2   :  { %11 = vsyncpa [#allocation6], 0 }
   0x3   :  { %12 = vsyncpa [#allocation4], 0 }
   0x4   :  { %14 = vsyncpa [#allocation4 + $0x1], 0  ;;  %s671_s12 = smov 0   ;;  %s673_s13 = smov 0  }
   0x5   :  { %s675_s14 = smov 0   ;;  %s677_s15 = smov 0  }
   0x6   :  { %s679_s16 = smov 0   ;;  %s681_s17 = smov 0  }
   0x7 LB: > { %s395_s18 = sadd.s32 4294967295, %s642_s17   ;;  %s396_s19 = sadd.s32 4294967294, %s642_s17   ;;  %s642_s17 = sphi %s681_s17, %s20_s17   ;;  %s638_s16 = sphi %s679_s16, %s874_s16   ;;  %s634_s15 = sphi %s677_s15, %s873_s15   ;;  %s630_s14 = sphi %s675_s14, %s872_s14   ;;  %s626_s13 = sphi %s673_s13, %s871_s13   ;;  %s622_s12 = sphi %s671_s12, %s870_s12  }
   0x8   : > { %p54_p0 = scmp.ne.s32.totalorder %s626_s13, %s622_s12  ;;  %p705_p1 = scmp.eq.s32.totalorder %s395_s18, 0 }
   0x9   : > { %p709_p2 = scmp.eq.s32.totalorder %s395_s18, 1  ;;  %p128_p3 = scmp.eq.s32.totalorder %s396_s19, 1 }
   0xa   : > { %p715_p4 = por %p705_p1, %p54_p0  ;;  %p397_p5 = scmp.ge.s32.totalorder %s642_s17, 1 }
   0xb   : > { %p720_p6 = por %p128_p3, %p54_p0  ;;  %p135_p7 = scmp.lt.s32.totalorder %s642_s17, 3 }
   0xc   : > { %s860_s22 = scalar_select %p715_p4, 1, 0 }
   0xd   : > { %s861_s23 = scalar_select %p720_p6, 1, 0 }
   0xe   : > { %p725_p8 = pnand %p397_p5, %p135_p7  ;;  %s644_s25 = smov [#allocation5]  }
   0xf   : > { %s147_s26 = sshll.u32 %s644_s25, 4  ;;  %s32_s28 = sadd.s32 1, %s638_s16  ;;  %s148_s26 = int_to_ptr.vmem [resolvable:$true] %s147_s26 }
  0x10   : > { %p433_p9 = pneg %p725_p8  ;;  %s515_s29 = scalar_lea.vmem %s148_s26, 256 }
  0x11   : > { %p516_p13 = scmp.ne.s32.totalorder %s148_s26, %s515_s29  ;;  %p523_p5 = scmp.lt.s32.totalorder %s148_s26, %s148_s26 }
  0x12   : > { %p734_p11 = pnand %p433_p9, %p705_p1  ;;  %p524_p7 = scmp.lt.s32.totalorder %s515_s29, %s515_s29 }
  0x14   : > { %p506_p12 = pneg %p734_p11  ;;  %p525_p6 = por %p524_p7, %p523_p5 }
  0x16   : > { %p518_p0 = pnand %p516_p13, %p506_p12 }
  0x18   : > { %p519_p3 = pneg %p518_p0 }
  0x1a   : > { %p526_p4 = pnand %p525_p6, %p519_p3 }
  0x1c   : > { %529 = shalt.err (!%p526_p4)
}
  0x1d   : > { %s645_s30 = smov 64   ;;  %s646_s4 = smov 4  }
  0x1e   : > { %436 = dma.hbm_to_vmem [thread:$0]  (!%p734_p11), %s854_s1, 256, %s148_s26, [#allocation6], %s645_s30, %s645_s30, %s646_s4  }
  0x1f   : > { %p34_p6 = scmp.ge.s32.totalorder %s32_s28, 2  ;;  %s41_s7 = sadd.s32 1, %s630_s14 }
  0x20   : > { %p48_p4 = scmp.ne.s32.totalorder %s630_s14, %s626_s13  ;;  %p49_p9 = scmp.eq.s32.totalorder %s642_s17, 0 }
  0x21   : > { %s876_s28 = smov (%p34_p6, %s32_s28), 0  ;;  %p446_p0 = scmp.lt.s32.totalorder %s642_s17, 2 }
  0x22   : > { %p752_p12 = por %p49_p9, %p48_p4  ;;  %p758_p13 = por %p709_p2, %p48_p4 }
  0x23   : > { %s36_s10 = ssub.s32 %s638_s16, %s876_s28  ;;  %s164_s11 = sand.u32 1, %s630_s14  }
  0x24   : > { %p39_p11 = scmp.eq.s32.totalorder %s36_s10, 0  ;;  %s400_s18 = sshll.u32 %s164_s11, 2 }
  0x25   : > { %s401_s25 = sshll.u32 %s638_s16, 6  ;;  %s168_s30 = scalar_lea.vmem [#allocation2], %s400_s18 }
  0x26   : > { %s767_s19 = scalar_select %p39_p11, %s630_s14, %s41_s7  }
  0x27   : > { %s174_s29 = scalar_lea.hbm %s853_s0, %s401_s25  ;;  %s176_s4 = sshll.u32 %s168_s30, 4  ;;  %s177_s4 = int_to_ptr.vmem [resolvable:$true] %s176_s4 }
  0x28   : > { %p775_p2 = pnand %p446_p0, %p752_p12  ;;  %s165_s5 = scalar_lea.sflag [#allocation3], %s164_s11 }
  0x29   : > { %s543_s6 = scalar_lea.vmem %s177_s4, 64  ;;  %s647_s7 = smov [#allocation2]  }
  0x2a   : > { %p532_p3 = pneg %p775_p2  ;;  %p544_p5 = scmp.ne.s32.totalorder %s177_s4, %s543_s6 }
  0x2b   : > { %s548_s10 = sshll.u32 %s647_s7, 4  ;;  %s549_s10 = int_to_ptr.vmem [resolvable:$false] %s548_s10 }
  0x2c   : > { %p546_p7 = pnand %p544_p5, %p532_p3  ;;  %s550_s25 = scalar_lea.vmem %s549_s10, 128 }
  0x2d   : > { %p551_p4 = scmp.lt.s32.totalorder %s177_s4, %s549_s10  ;;  %p552_p9 = scmp.lt.s32.totalorder %s550_s25, %s543_s6 }
  0x2e   : > { %p547_p6 = pneg %p546_p7 }
  0x2f   : > { %p553_p11 = por %p552_p9, %p551_p4 }
  0x31   : > { %p554_p10 = pnand %p553_p11, %p547_p6 }
  0x33   : > { %557 = shalt.err (!%p554_p10)
}
  0x34   : > { %440 = dma.hbm_to_vmem [thread:$0]  (!%p775_p2), %s174_s29, 64, %s177_s4, %s165_s5  }
  0x35   : > { %185 = sbr.rel (%p725_p8) target bundleno = 281 (0x119), region = 32  ;;  %s786_s8 = sand.u32 (!%p725_p8), 1, %s626_s13  }
  0x36   : > { %s403_s11 = sshll.u32 (!%p725_p8), %s786_s8, 2  ;;  %s188_s18 = scalar_lea.sflag (!%p725_p8), [#allocation3], %s786_s8 }
  0x37   : > { %s191_s26 = scalar_lea.vmem (!%p725_p8), [#allocation2], %s403_s11  ;;  %p867_p12 = scmp.ne.s32.totalorder (!%p725_p8), %s860_s22, 0 }
  0x3a   : > { %609 = dma.done.wait (%p867_p12), %s188_s18, 64  }
  0x3b   : > { %611 = vsyncadd (%p867_p12), %s188_s18, 4294967232 }
  0x3c   : > { %613 = dma.done.wait (%p705_p1), [#allocation6], 256  }
  0x3d   : > { %615 = vsyncadd (%p705_p1), [#allocation6], 4294967040  ;;  %v648_v0 = vmov 0.0   ;;  %vm649_vm0 = vmmov 0   ;;  %v502_v1 = vld [vmem:[#allocation5 + $0x8] sm:$0xff]   ;;  %v503_v2 = vld [vmem:[#allocation5] sm:$0xff]  }
  0x3e   : > { %417 = vmatprep.subr.bf16.mxu0 %v648_v0  ;;  %421 = vmatprep.mubr.msk.bf16.mxu0 %vm649_vm0, %v648_v0  ;;  %v219_v3 = vld [vmem:[%s191_s26] sm:$0xf]  ;;  %vm243_vm1 = vcmask 261120   ;;  %s411_s20 = sshll.u32 %s634_s15, 6  ;;  %s217_s27 = scalar_lea.vmem [#allocation7], %s403_s11  ;;  %vm288_vm2 = vcmask 781312  }
  0x3f   : > { %418 = vmatpush3.bf16.msra.mxu0 %v502_v1  ;;  %v406_v4 = vld [vmem:[%s855_s2] ss:$0 sm:$0xff]  ;;  %s305_s29 = sshll.u32 %s217_s27, 4  ;;  %s805_s21 = scalar_lea.hbm %s856_s3, %s411_s20  ;;  %s807_s29 = int_to_ptr.vmem [resolvable:$true] %s305_s29 }
  0x40   : > { %419 = vmatprep.subr.bf16.mxu0 %v648_v0  ;;  %s291_s15 = scalar_lea.sflag [#allocation4], %s786_s8  ;;  %s558_s5 = scalar_lea.vmem %s807_s29, 64 }
  0x41   : > { %p559_p1 = scmp.ne.s32.totalorder %s807_s29, %s558_s5  ;;  %s650_s6 = smov [#allocation7]  }
  0x42   : > { %s562_s7 = sshll.u32 %s650_s6, 4  ;;  %s563_s7 = int_to_ptr.vmem [resolvable:$false] %s562_s7 }
  0x43   : > { %420 = vmatpush3.bf16.msra.mxu0 %v503_v2  ;;  %p560_p8 = pnand %p559_p1, %p758_p13  ;;  %s564_s10 = scalar_lea.vmem %s563_s7, 128 }
  0x44   : > { %p565_p0 = scmp.lt.s32.totalorder %s807_s29, %s563_s7  ;;  %p566_p2 = scmp.lt.s32.totalorder %s564_s10, %s558_s5 }
  0x45   : > { %p561_p10 = pneg %p560_p8 }
  0x46   : > { %422 = vmatmul.mubr.msk.bf16.vlgmr.msra.gmra.mxu0 %vm243_vm1, %v219_v3  ;;  %p567_p3 = por %p566_p2, %p565_p0 }
  0x48   : > { %p568_p5 = pnand %p567_p3, %p561_p10 }
 0x106   : > { %v281_v5 = vpop.f32.mrf.mxu0 }
 0x107   : > { %v282_v6 = vadd.f32 %v406_v4, %v281_v5 }
 0x108   : > { %v423_v7 = vpop.f32.mrf.mxu0 }
 0x109   : > { %v287_v8 = vpack.c.bf16 %v282_v6, %v282_v6 }
 0x10a   : > { %v284_v9 = vpop.f32.mrf.mxu0 }
 0x10b   : > { %289 = vst.msk [vmem:[%s217_s27] sm:$0xf] %vm288_vm2, %v287_v8 }
 0x10c   : > { %v424_v10 = vpop.f32.mrf.mxu0 }
 0x10d   : > { %571 = shalt.err (!%p568_p5)
}
 0x10e   : > { %s572_s25 = scalar_lea.hbm %s805_s21, 64  ;;  %s576_s18 = scalar_lea.hbm %s856_s3, 128 }
 0x10f   : > { %p573_p7 = scmp.ne.s32.totalorder %s805_s21, %s572_s25  ;;  %p577_p9 = scmp.lt.s32.totalorder %s805_s21, %s856_s3 }
 0x110   : > { %p578_p11 = scmp.lt.s32.totalorder %s576_s18, %s572_s25 }
 0x111   : > { %p574_p6 = pnand %p573_p7, %p758_p13 }
 0x112   : > { %p579_p12 = por %p578_p11, %p577_p9 }
 0x113   : > { %p575_p4 = pneg %p574_p6 }
 0x115   : > { %p580_p1 = pnand %p579_p12, %p575_p4 }
 0x117   : > { %583 = shalt.err (!%p580_p1)
}
 0x118   : > { %431 = dma.vmem_to_hbm [thread:$0]  (%p758_p13), %s807_s29, 64, %s805_s21, %s291_s15  }
 0x119 PF: > { %s317_s24 = sand.u32 1, %s622_s12   ;;  %p868_p8 = scmp.ne.s32.totalorder %s861_s23, 0 }
 0x11a   : > { %p869_p10 = scmp.ge.s32.totalorder %s642_s17, 2  ;;  %s318_s20 = scalar_lea.sflag [#allocation4], %s317_s24 }
 0x11c   : > { %p442_p0 = pnand %p869_p10, %p868_p8 }
 0x11e   : > { %p443_p2 = pneg %p442_p0 }
 0x120   : > { %617 = dma.done.wait (%p443_p2), %s318_s20, 64  }
 0x121   : > { %619 = vsyncadd (%p443_p2), %s318_s20, 4294967232  ;;  %s20_s17 = sadd.s32 1, %s642_s17   ;;  %s870_s12 = smov %s626_s13 }
 0x122   : > { %p17_p3 = scmp.ge.s32.totalorder %s20_s17, 4   ;;  %s871_s13 = smov %s630_s14 }
 0x123   : > { %s872_s14 = smov %s767_s19  ;;  %s873_s15 = smov %s638_s16 }
 0x124   : > { %s874_s16 = smov %s876_s28  ;;  %19 = sbr.rel (!%p17_p3) target bundleno = 7 (0x7), region = 81 }
 0x129   :  { %323 = vsyncpa [#allocation3], 1 }
 0x12a   :  { %325 = vsyncpa [#allocation3 + $0x1], 1 }
 0x12b   :  { %326 = vsyncpa [#allocation6], 1 }
 0x12c   :  { %327 = vsyncpa [#allocation4], 1 }
 0x12d   :  { %329 = vsyncpa [#allocation4 + $0x1], 1 }

</bundles_post_ra>
